<compile_context>
chip_gen: v5e
topology: v5e:2x2
jax: 0.10.0
libtpu: 0.0.40
codegen_flags: <defaults>
</compile_context>

<pallas_src>
import math

import jax
import jax.numpy as jnp
from jax.experimental import pallas as pl
from jax.experimental.pallas import tpu as pltpu

SPLIT = 2  # torch.split(x1, SPLIT, dim=3)


def _round_up(a, m):
    return -(-a // m) * m


def split_cat_kernel(x_ref, o_ref):
    # x_ref block: (B, Bh, W)   o_ref block: (B, Bh*out_w)  -- lane-dense
    b, bh, _w = x_ref.shape
    out_w = o_ref.shape[-1] // bh
    # Lane-slice the first out_w columns of every h-row, then present the tile
    # lane-dense so the store is a full-width vst and the writeback DMA is dense.
    o_ref[...] = x_ref[:, :, :out_w].reshape(b, bh * out_w)


def split_cat_forward(x, *, split_size=SPLIT,
                      vmem_budget_bytes=6 << 20,      # per buffer set (x2 dbl-buf)
                      vmem_limit_bytes=32 << 20,      # safe on v5e/v6e/v7x
                      min_grid_steps=4,
                      use_pallas=None):
    """x: (N, C, H, W) -> cat(split(x, split_size, dim=3)[:2], dim=3)."""
    N, C, H, W = x.shape
    if W <= split_size:
        # torch.split would produce a single chunk and v1[1] would raise.
        raise ValueError("need at least two split chunks along dim 3")
    # First two chunks have sizes (split_size, min(split_size, W - split_size)).
    out_w = min(W, 2 * split_size)

    if use_pallas is None:
        # Tiny standalone inputs: a plain XLA slice fuses with neighbors and
        # avoids fixed pallas_call overhead.
        use_pallas = x.size >= (1 << 20)
    if not use_pallas:
        return x[:, :, :, :out_w]

    NC = N * C
    out_cols = H * out_w
    x2 = x.reshape(NC, H, W)  # free reshape of a contiguous array

    itemsize = jnp.dtype(x.dtype).itemsize
    lane = 128
    sub = max(8, 32 // itemsize)                        # dtype-aware sublane align
    bh_align = math.lcm(sub, lane // math.gcd(out_w, lane))

    def block_bytes(b, bh):
        # VMEM blocks are lane/sublane padded; account for that.
        in_b = b * _round_up(bh, sub) * _round_up(W, lane) * itemsize
        out_b = _round_up(b, sub) * _round_up(bh * out_w, lane) * itemsize
        return in_b + out_b

    # ---- choose rows-per-block B (and h-tile Bh) under the VMEM budget -------
    bh = H
    if NC <= sub:
        B = NC                                           # full-extent: always legal
    else:
        per_row = block_bytes(1, H)
        rows_fit = max(1, vmem_budget_bytes // (2 * per_row))   # x2: double-buffer
        B = max(sub, (min(rows_fit, NC) // sub) * sub)
        # Cap B so the grid has several steps (v7x megacore sharding + pipelining).
        target = _round_up(pl.cdiv(NC, min_grid_steps), sub)
        B = max(sub, min(B, target))

    # Guard: if the chosen (B, full-H) block still busts the budget, tile H too.
    if 2 * block_bytes(B, bh) > vmem_budget_bytes and H > bh_align:
        fit = vmem_budget_bytes // (2 * block_bytes(B, bh_align))
        bh = max(bh_align, min(H // bh_align, max(1, int(fit))) * bh_align)

    # If N*C alone gives too few grid steps, create extra steps along H.
    n_i = pl.cdiv(NC, B)
    if n_i * pl.cdiv(H, bh) < min_grid_steps and bh == H and H > bh_align:
        want_j = pl.cdiv(min_grid_steps, n_i)
        cand = _round_up(pl.cdiv(H, want_j), bh_align)
        if cand < H:
            bh = cand

    grid = (pl.cdiv(NC, B), pl.cdiv(H, bh))

    out2 = pl.pallas_call(
        split_cat_kernel,
        out_shape=jax.ShapeDtypeStruct((NC, out_cols), x.dtype),
        grid=grid,
        in_specs=[pl.BlockSpec((B, bh, W), lambda i, j: (i, j, 0))],
        out_specs=pl.BlockSpec((B, bh * out_w), lambda i, j: (i, j)),
        compiler_params=pltpu.CompilerParams(
            dimension_semantics=("parallel", "parallel"),
            vmem_limit_bytes=vmem_limit_bytes,
        ),
    )(x2)

    # (NC, H*out_w) is byte-identical to (N, C, H, out_w): free reshape.
    return out2.reshape(N, C, H, out_w)


def _reference(x, split_size=SPLIT):
    out_w = min(x.shape[3], 2 * split_size)
    return jnp.concatenate(
        [x[:, :, :, 0:split_size], x[:, :, :, split_size:out_w]], axis=3)


if __name__ == "__main__":
    key = jax.random.PRNGKey(0)

    # Same shape as the PyTorch module's input: NCHW (1, 3, 64, 64).
    x = jax.random.normal(key, (1, 3, 64, 64), dtype=jnp.float32)
    y = jax.block_until_ready(split_cat_forward(x, use_pallas=True))
    assert y.shape == (1, 3, 64, 2 * SPLIT), y.shape
    assert jnp.array_equal(y, _reference(x)), "mismatch vs reference (f32)"

    # A second small case exercising a multi-step grid + partial last row-block.
    k2 = jax.random.PRNGKey(0)
    x2 = jax.random.normal(k2, (2, 5, 16, 8), dtype=jnp.float32)
    y2 = jax.block_until_ready(split_cat_forward(x2, use_pallas=True))
    assert y2.shape == (2, 5, 16, 4), y2.shape
    assert jnp.array_equal(y2, _reference(x2)), "mismatch vs reference (multi-block)"

    # bf16 exercises the dtype-aware sublane alignment path.
    xb = x.astype(jnp.bfloat16)
    yb = jax.block_until_ready(split_cat_forward(xb, use_pallas=True))
    assert jnp.array_equal(yb, _reference(xb)), "mismatch vs reference (bf16)"

    print("KERNEL_OK")
</pallas_src>

<mosaic_0001>
module attributes {stable_mosaic.version = 11 : i64} {
  func.func @split_cat_kernel(%arg0: i32, %arg1: i32, %arg2: memref<3x32x64xf32, #tpu.memory_space<vmem>>, %arg3: memref<3x128xf32, #tpu.memory_space<vmem>>) attributes {dimension_semantics = [#tpu.dimension_semantics<parallel>, #tpu.dimension_semantics<parallel>], iteration_bounds = array<i64: 1, 2>, scalar_prefetch = 0 : i64, scratch_operands = 0 : i64, tpu.core_type = #tpu.core_type<tc>, window_params = [{transform_indices = @transform_0, window_bounds = array<i64: 3, 32, 64>}, {transform_indices = @transform_1, window_bounds = array<i64: 3, 128>}]} {
    %c0 = arith.constant 0 : index
    %c0_0 = arith.constant 0 : index
    %c0_1 = arith.constant 0 : index
    %0 = vector.load %arg2[%c0, %c0_0, %c0_1] : memref<3x32x64xf32, #tpu.memory_space<vmem>>, vector<3x32x4xf32>
    %1 = vector.shape_cast %0 : vector<3x32x4xf32> to vector<3x128xf32>
    %c0_2 = arith.constant 0 : index
    %c0_3 = arith.constant 0 : index
    %2 = vector.load %arg3[%c0_2, %c0_3] : memref<3x128xf32, #tpu.memory_space<vmem>>, vector<3x128xf32>
    tpu.vector_store %arg3[%c0_2, %c0_3], %1 {strides = array<i32>} : memref<3x128xf32, #tpu.memory_space<vmem>>, vector<3x128xf32>,
    return
  }
  func.func @transform_0(%arg0: i32, %arg1: i32) -> (i32, i32, i32) {
    %c0_i32 = arith.constant 0 : i32
    %c0_i32_0 = arith.constant 0 : i32
    return %arg0, %arg1, %c0_i32 : i32, i32, i32
  }
  func.func @transform_1(%arg0: i32, %arg1: i32) -> (i32, i32) {
    %c0_i32 = arith.constant 0 : i32
    return %arg0, %arg1 : i32, i32
  }
}

</mosaic_0001>

<bundles_post_ra>
// kernel: tpu_custom_call.1
= control target key start
LH: loop header
LB: loop body
LE: loop exit
PB: predicated region body
PF: predicated region fallthrough
CT: control target
= control target key end

     0   :  { %6 = vsyncpa [#allocation3], 0  ;;  %s1203_s0 = inlined_call_operand.hbm [shape: f32[3,64,64], index: 0, kind: input, shape index: {}]   ;;  %s1204_s1 = inlined_call_operand.hbm [shape: f32[3,256], index: 1, kind: output, shape index: {}]  }
   0x1   :  { %8 = vsyncpa [#allocation3 + $0x1], 0 }
   0x2   :  { %9 = vsyncpa [#allocation4], 0 }
   0x3   :  { %11 = vsyncpa [#allocation4 + $0x1], 0  ;;  %s953_s6 = smov 0   ;;  %s955_s7 = smov 0  }
   0x4   :  { %s957_s8 = smov 0   ;;  %s959_s9 = smov 0  }
   0x5   :  { %s961_s10 = smov 0   ;;  %s963_s11 = smov 0  }
   0x6 LB: > { %s700_s12 = sadd.s32 4294967295, %s902_s11   ;;  %s701_s13 = sadd.s32 4294967294, %s902_s11   ;;  %s902_s11 = sphi %s963_s11, %s17_s11   ;;  %s898_s10 = sphi %s961_s10, %s1213_s10   ;;  %s894_s9 = sphi %s959_s9, %s1212_s9   ;;  %s890_s8 = sphi %s957_s8, %s1211_s8   ;;  %s886_s7 = sphi %s955_s7, %s1210_s7   ;;  %s882_s6 = sphi %s953_s6, %s1209_s6  }
   0x7   : > { %s26_s14 = sadd.s32 1, %s898_s10  ;;  %s38_s15 = sadd.s32 1, %s890_s8 }
   0x8   : > { %p27_p0 = scmp.ge.s32.totalorder %s26_s14, 2  ;;  %p45_p1 = scmp.ne.s32.totalorder %s890_s8, %s886_s7 }
   0x9   : > { %p46_p2 = scmp.eq.s32.totalorder %s902_s11, 0  ;;  %p51_p3 = scmp.ne.s32.totalorder %s886_s7, %s882_s6 }
   0xa   : > { %s1215_s14 = smov (%p27_p0, %s26_s14), 0  ;;  %p52_p5 = scmp.eq.s32.totalorder %s700_s12, 0 }
   0xb   : > { %p994_p4 = por %p46_p2, %p45_p1  ;;  %s34_s17 = ssub.s32 %s898_s10, %s1215_s14 }
   0xc   : > { %p77_p6 = scmp.eq.s32.totalorder %s700_s12, 1  ;;  %p36_p7 = scmp.eq.s32.totalorder %s34_s17, 0 }
   0xd   : > { %p1000_p8 = por %p52_p5, %p51_p3  ;;  %p83_p10 = scmp.eq.s32.totalorder %s701_s13, 1 }
   0xe   : > { %p1004_p9 = por %p77_p6, %p45_p1  ;;  %p703_p12 = scmp.ge.s32.totalorder %s902_s11, 2 }
   0xf   : > { %s1009_s20 = scalar_select %p36_p7, %s890_s8, %s38_s15  }
  0x10   : > { %p1011_p11 = por %p83_p10, %p51_p3  ;;  %99 = sbr.rel (%p703_p12) target bundleno = 35 (0x23), region = 16 }
  0x15   : > { %s103_s22 = sand.u32 1, %s890_s8   ;;  %s714_s23 = sshll.u32 %s898_s10, 5 }
  0x16   : > { %s715_s24 = smul.u32 96, %s103_s22  ;;  %s115_s27 = scalar_lea.hbm %s1203_s0, %s714_s23 }
  0x17   : > { %s128_s28 = sshll.u32 %s115_s27, 4  ;;  %s904_s4 = smov 1024   ;;  %s129_s28 = int_to_ptr.hbm [resolvable:$true] %s128_s28 }
  0x18   : > { %s717_s29 = scalar_select %p994_p4, [#allocation0], [#allocation8] }
  0x19   : > { %s107_s30 = scalar_lea.vmem [#allocation2], %s715_s24  ;;  %718 = sst [smem:[#allocation7]] (%p994_p4), %s904_s4 }
  0x1a   : > { %s130_s2 = sshll.u32 %s107_s30, 4  ;;  %s120_s3 = sld [smem:[%s717_s29]]   ;;  %s131_s2 = int_to_ptr.vmem [resolvable:$true] %s130_s2 }
  0x1b   : > { %s905_s5 = smov 512   ;;  %s906_s12 = smov 4  }
  0x1c   : > { %719 = sst [smem:[#allocation7 + $0x1]] (%p994_p4), %s905_s5  ;;  %s907_s13 = smov 128  }
  0x1d   : > { %720 = sst [smem:[#allocation7 + $0x2]] (%p994_p4), %s906_s12  ;;  %s908_s17 = smov 8  }
  0x1e   : > { %721 = sst [smem:[#allocation7 + $0x3]] (%p994_p4), %s907_s13  ;;  %s104_s24 = scalar_lea.sflag [#allocation3], %s103_s22 }
  0x1f   : > { %722 = sst [smem:[#allocation7 + $0x4]] (%p994_p4), %s907_s13  ;;  %s909_s25 = smov [#allocation6]  }
  0x20   : > { %s706_s15 = sshll.u32 %s120_s3, 26  ;;  %723 = sst [smem:[#allocation7 + $0x5]] (%p994_p4), %s908_s17 }
  0x21   : > { %s707_s23 = sadd.s32 134217728, %s706_s15 }
  0x22   : > { %724 = dma.general (%p994_p4), %s129_s28, 1536, %s131_s2, %s104_s24, %s909_s25, [#allocation7], %s707_s23, 0  }
  0x23 PF: > { %p708_p13 = scmp.ge.s32.totalorder %s902_s11, 1  ;;  %p151_p0 = scmp.lt.s32.totalorder %s902_s11, 3 }
  0x25   : > { %p152_p1 = pnand %p708_p13, %p151_p0 }
  0x26   : > { %s1042_s26 = sand.u32 (!%p152_p1), 1, %s886_s7  }
  0x27   : > { %155 = sbr.rel (%p152_p1) target bundleno = 258 (0x102), region = 24  ;;  %s158_s29 = scalar_lea.sflag (!%p152_p1), [#allocation3], %s1042_s26 }
  0x28   : > { %s716_s27 = smul.u32 (!%p152_p1), 96, %s1042_s26 }
  0x2a   : > { %s1046_s30 = scalar_lea.vmem (!%p152_p1), [#allocation2], %s716_s27 }
  0x2c   : > { %873 = dma.done.wait (%p1000_p8), %s158_s29, 1536  }
  0x2d   : > { %875 = vsyncadd (%p1000_p8), %s158_s29, 4294965760  ;;  %v910_v0 = vmov 1983009808   ;;  %v911_v3 = vmov 1934713408   ;;  %v1055_v5 = vld [vmem:[%s1046_s30 + $0x8] sm:$0xff] }
  0x2e   : > { %v201_v1 = vunpack.c.l.s4 %v910_v0  ;;  %v223_v4 = vunpack.c.l.s4 %v911_v3  ;;  %v188_v6 = vld [vmem:[%s1046_s30 + $0x28] sm:$0xff]  ;;  %vm196_vm0 = vcmask 1047556   ;;  %v183_v10 = vld [vmem:[%s1046_s30] sm:$0xff]  ;;  %s912_s16 = smov 32   ;;  %s913_s18 = smov 8   ;;  %v252_v46 = vrot.slane %v1055_v5, 4 }
  0x2f   : > { %v1059_v7 = vld [vmem:[%s1046_s30 + $0x48] sm:$0xff]  ;;  %v187_v11 = vld [vmem:[%s1046_s30 + $0x20] sm:$0xff]  ;;  %v198_v14 = vrot.slane %v183_v10, 4  ;;  %s914_s22 = smov 24   ;;  %v262_v42 = vrot.slane %v188_v6, 4  ;;  %s915_s28 = smov 16  }
  0x30   : > { %v1052_v2 = vunpack.c.0.s8 %v201_v1  ;;  %v250_v8 = vrot.slane %v1059_v7, 4  ;;  %v191_v12 = vld [vmem:[%s1046_s30 + $0x40] sm:$0xff]  ;;  %v208_v15 = vrot.slane %v187_v11, 4  ;;  %v1067_v17 = vunpack.c.0.s8 %v223_v4  ;;  %s916_s2 = smov 4   ;;  %v193_v51 = vld [vmem:[%s1046_s30 + $0x50] sm:$0xff]  ;;  %s917_s3 = smov 36  }
  0x31   : > { %v195_v13 = vrot.slane %v191_v12, 4  ;;  %v199_v25 = vsel %vm196_vm0, %v191_v12, %v198_v14  ;;  %v263_v47 = vsel %vm196_vm0, 0.0, %v262_v42  ;;  %v253_v56 = vsel %vm196_vm0, %v1059_v7, %v252_v46  ;;  %v189_v58 = vld [vmem:[%s1046_s30 + $0x30] sm:$0xff]  ;;  %s918_s4 = smov 12   ;;  %s919_s5 = smov 28  }
  0x32   : > { %v267_v9 = vperm.slane %v188_v6, %v1052_v2  ;;  %v213_v16 = vperm.slane %v187_v11, %v1052_v2  ;;  %v251_v18 = vsel %vm196_vm0, %v250_v8, %v1055_v5  ;;  %v209_v22 = vsel %vm196_vm0, 0.0, %v208_v15  ;;  %v185_v60 = vld [vmem:[%s1046_s30 + $0x10] sm:$0xff]  ;;  %s920_s12 = smov 20   ;;  %v194_v11 = vld [vmem:[%s1046_s30 + $0x58] sm:$0xff]  ;;  %s921_s13 = smov 44  }
  0x33   : > { %v257_v20 = vperm.slane %v251_v18, %v1052_v2  ;;  %v197_v21 = vsel %vm196_vm0, %v195_v13, %v183_v10  ;;  %v217_v26 = vperm.slane %v209_v22, %v1052_v2  ;;  %v207_v28 = vperm.slane %v199_v25, %v1052_v2  ;;  %s922_s15 = smov 40   ;;  %s923_s17 = smov 48  }
  0x34   : > { %v272_v19 = vrot.slane %v267_v9, 4  ;;  %v218_v23 = vrot.slane %v213_v16, 4  ;;  %v203_v24 = vperm.slane %v197_v21, %v1052_v2  ;;  %v271_v53 = vperm.slane %v263_v47, %v1052_v2  ;;  %s924_s23 = smov 56   ;;  %s925_s24 = smov 52  }
  0x35   : > { %v230_v31 = vrot.slane %v217_v26, 4  ;;  %v232_v33 = vrot.slane %v207_v28, 4  ;;  %v274_v44 = vrot.slane %v257_v20, 4  ;;  %v304_v59 = vrot.slane %v193_v51, 4  ;;  %s926_s25 = smov 60   ;;  %s927_s27 = smov 68  }
  0x36   : > { %v273_v27 = vsel %vm196_vm0, %v272_v19, %v257_v20  ;;  %v220_v30 = vrot.slane %v203_v24, 4  ;;  %v219_v32 = vsel %vm196_vm0, %v218_v23, %v203_v24  ;;  %v261_v62 = vperm.slane %v253_v56, %v1052_v2  ;;  %v190_v23 = vld [vmem:[%s1046_s30 + $0x38] sm:$0xff]  ;;  %s928_s29 = smov 64  }
  0x37   : > { %v279_v29 = vperm.slane %v273_v27, %v1067_v17  ;;  %v1083_v35 = vperm.slane %v219_v32, %v1067_v17  ;;  %v231_v37 = vsel %vm196_vm0, %v230_v31, %v207_v28  ;;  %v233_v38 = vsel %vm196_vm0, %v217_v26, %v232_v33 }
  0x38   : > { %v221_v34 = vsel %vm196_vm0, %v213_v16, %v220_v30  ;;  %v241_v39 = vperm.slane %v233_v38, %v1067_v17  ;;  %v237_v40 = vperm.slane %v231_v37, %v1067_v17  ;;  %v275_v50 = vsel %vm196_vm0, %v267_v9, %v274_v44  ;;  %v186_v16 = vld [vmem:[%s1046_s30 + $0x18] sm:$0xff]  ;;  %s929_s30 = smov 72  }
  0x39   : > { %441 = vrot.lane.b32.xlu1 %v279_v29, %s912_s16  ;;  %v229_v36 = vperm.slane %v221_v34, %v1067_v17  ;;  %v242_v41 = vrot.slane %v1083_v35, 4  ;;  %v296_v43 = vrot.slane %v279_v29, 4  ;;  %v283_v55 = vperm.slane %v275_v50, %v1067_v17  ;;  %s930_s16 = smov 80  }
  0x3a   : > { %433 = vrot.lane.b32.xlu2 %v241_v39, %s914_s22  ;;  %v248_v52 = vrot.slane %v241_v39, 4  ;;  %v246_v57 = vrot.slane %v237_v40, 4  ;;  %v284_v63 = vrot.slane %v271_v53, 4  ;;  %v321_v3 = vperm.slane %v189_v58, %v1052_v2  ;;  %s932_s22 = smov 84  }
  0x3b   : > { %417 = vrot.lane.b32.xlu0 %v229_v36, %s913_s18  ;;  %v243_v45 = vsel %vm196_vm0, 0.0, %v242_v41  ;;  %v244_v48 = vrot.slane %v229_v36, 4  ;;  %v297_v49 = vsel %vm196_vm0, 0.0, %v296_v43  ;;  %v298_v0 = vrot.slane %v283_v55, 4  ;;  %s931_s18 = smov 76  }
  0x3c   : > { %v249_v61 = vsel %vm196_vm0, 0.0, %v248_v52  ;;  %v247_v1 = vsel %vm196_vm0, 0.0, %v246_v57  ;;  %v305_v4 = vsel %vm196_vm0, %v304_v59, %v185_v60  ;;  %v285_v5 = vsel %vm196_vm0, %v284_v63, %v261_v62 }
  0x3d   : > { %v245_v54 = vsel %vm196_vm0, 0.0, %v244_v48  ;;  %v286_v6 = vrot.slane %v261_v62, 4  ;;  %v299_v7 = vsel %vm196_vm0, 0.0, %v298_v0  ;;  %v311_v8 = vperm.slane %v305_v4, %v1052_v2 }
  0x3e   : > { %v326_v9 = vrot.slane %v321_v3, 4  ;;  %v291_v10 = vperm.slane %v285_v5, %v1067_v17  ;;  %v358_v13 = vrot.slane %v194_v11, 4  ;;  %v316_v14 = vrot.slane %v189_v58, 4 }
  0x3f   : > { %v287_v12 = vsel %vm196_vm0, %v271_v53, %v286_v6  ;;  %v306_v21 = vrot.slane %v185_v60, 4  ;;  %v1127_v28 = vperm.slane %v190_v23, %v1052_v2  ;;  %v370_v30 = vrot.slane %v190_v23, 4 }
  0x40   : > { %v327_v15 = vsel %vm196_vm0, %v326_v9, %v311_v8  ;;  %v359_v18 = vsel %vm196_vm0, %v358_v13, %v186_v16  ;;  %v300_v19 = vrot.slane %v291_v10, 4  ;;  %v295_v20 = vperm.slane %v287_v12, %v1067_v17 }
  0x41   : > { %425 = vrot.lane.b32.xlu1 %v237_v40, %s915_s28  ;;  %v333_v22 = vperm.slane %v327_v15, %v1067_v17  ;;  %v317_v24 = vsel %vm196_vm0, 0.0, %v316_v14  ;;  %v1123_v26 = vperm.slane %v359_v18, %v1052_v2  ;;  %v328_v32 = vrot.slane %v311_v8, 4  ;;  %s933_s28 = smov 92  }
  0x42   : > { %445 = vrot.lane.b32.xlu2 %v297_v49, %s917_s3  ;;  %v302_v25 = vrot.slane %v295_v20, 4  ;;  %v301_v27 = vsel %vm196_vm0, 0.0, %v300_v19  ;;  %v307_v33 = vsel %vm196_vm0, %v193_v51, %v306_v21  ;;  %v325_v34 = vperm.slane %v317_v24, %v1052_v2  ;;  %s935_s3 = smov 96  }
  0x43   : > { %413 = vrot.lane.b32.xlu0 %v243_v45, %s916_s2  ;;  %v382_v29 = vrot.slane %v1123_v26, 4  ;;  %v350_v31 = vrot.slane %v333_v22, 4  ;;  %v360_v38 = vrot.slane %v186_v16, 4  ;;  %v371_v39 = vsel %vm196_vm0, 0.0, %v370_v30  ;;  %s934_s2 = smov 88  }
  0x44   : > { %v303_v36 = vsel %vm196_vm0, 0.0, %v302_v25  ;;  %v379_v41 = vperm.slane %v371_v39, %v1052_v2  ;;  %v315_v43 = vperm.slane %v307_v33, %v1052_v2  ;;  %v338_v44 = vrot.slane %v325_v34, 4 }
  0x45   : > { %v383_v37 = vsel %vm196_vm0, %v1127_v28, %v382_v29  ;;  %v361_v42 = vsel %vm196_vm0, %v194_v11, %v360_v38  ;;  %v351_v47 = vsel %vm196_vm0, 0.0, %v350_v31  ;;  %v329_v48 = vsel %vm196_vm0, %v321_v3, %v328_v32 }
  0x46   : > { %v391_v40 = vperm.slane %v383_v37, %v1067_v17  ;;  %v369_v45 = vperm.slane %v361_v42, %v1052_v2  ;;  %v392_v46 = vrot.slane %v379_v41, 4  ;;  %v340_v49 = vrot.slane %v315_v43, 4 }
  0x47   : > { %v337_v52 = vperm.slane %v329_v48, %v1067_v17  ;;  %v339_v53 = vsel %vm196_vm0, %v338_v44, %v315_v43  ;;  %v380_v3 = vrot.slane %v1127_v28, 4  ;;  %vm536_vm1 = vcmask 31744  }
  0x48   : > { %v393_v50 = vsel %vm196_vm0, %v392_v46, %v369_v45  ;;  %v345_v2 = vperm.slane %v339_v53, %v1067_v17  ;;  %v394_v57 = vrot.slane %v369_v45, 4  ;;  %v406_v6 = vrot.slane %v391_v40, 4 }
  0x49   : > { %421 = vrot.lane.b32.xlu1 %v245_v54, %s918_s4  ;;  %v399_v51 = vperm.slane %v393_v50, %v1067_v17  ;;  %v352_v58 = vrot.slane %v337_v52, 4  ;;  %v381_v8 = vsel %vm196_vm0, %v380_v3, %v1123_v26  ;;  %s936_s4 = smov 104   ;;  %vm538_vm2 = vcmask 64512  }
  0x4a   : > { %429 = vrot.lane.b32.xlu2 %v247_v1, %s920_s12  ;;  %v354_v60 = vrot.slane %v345_v2, 4  ;;  %v407_v9 = vsel %vm196_vm0, 0.0, %v406_v6  ;;  %s938_s12 = smov 108   ;;  %vm540_vm3 = vcmask 97280   ;;  %vm542_vm4 = vcmask 130048  }
  0x4b   : > { %437 = vrot.lane.b32.xlu0 %v249_v61, %s919_s5  ;;  %v408_v54 = vrot.slane %v399_v51, 4  ;;  %v395_v61 = vsel %vm196_vm0, %v379_v41, %v394_v57  ;;  %v353_v63 = vsel %vm196_vm0, 0.0, %v352_v58  ;;  %s937_s5 = smov 100   ;;  %vm544_vm5 = vcmask 162816  }
  0x4c   : > { %v403_v62 = vperm.slane %v395_v61, %v1067_v17  ;;  %v355_v4 = vsel %vm196_vm0, 0.0, %v354_v60  ;;  %vm546_vm6 = vcmask 195584   ;;  %vm548_vm7 = vcmask 228352  }
  0x4d   : > { %v409_v56 = vsel %vm196_vm0, 0.0, %v408_v54  ;;  %vm550_vm8 = vcmask 261120   ;;  %vm552_vm9 = vcmask 293888   ;;  %vm554_vm10 = vcmask 326656  }
  0x4e   : > { %v410_v0 = vrot.slane %v403_v62, 4  ;;  %vm556_vm11 = vcmask 359424   ;;  %vm558_vm12 = vcmask 392192   ;;  %vm560_vm13 = vcmask 424960  }
  0x4f   : > { %vm562_vm14 = vcmask 457728   ;;  %vm564_vm15 = vcmask 490496  }
  0x50   : > { %v411_v5 = vsel %vm196_vm0, 0.0, %v410_v0 }
  0x51   : > { %453 = vrot.lane.b32.xlu1 %v299_v7, %s921_s13  ;;  %s939_s13 = smov 116  }
  0x52   : > { %457 = vrot.lane.b32.xlu2 %v291_v10, %s923_s17  ;;  %v387_v10 = vperm.slane %v381_v8, %v1067_v17  ;;  %s941_s17 = smov 120  }
  0x53   : > { %449 = vrot.lane.b32.xlu0 %v283_v55, %s922_s15  ;;  %v341_v55 = vsel %vm196_vm0, %v325_v34, %v340_v49  ;;  %s940_s15 = smov 112  }
  0x54   : > { %v349_v59 = vperm.slane %v341_v55, %v1067_v17  ;;  %v404_v11 = vrot.slane %v387_v10, 4 }
  0x56   : > { %v356_v1 = vrot.slane %v349_v59, 4  ;;  %v405_v12 = vsel %vm196_vm0, 0.0, %v404_v11 }
  0x58   : > { %v357_v7 = vsel %vm196_vm0, 0.0, %v356_v1  ;;  %vm566_vm0 = vcmask 523264  }
  0x59   : > { %465 = vrot.lane.b32.xlu1 %v295_v20, %s924_s23  ;;  %s942_s23 = smov 124  }
  0x5a   : > { %469 = vrot.lane.b32.xlu2 %v303_v36, %s926_s25  ;;  %s711_s25 = sshll.u32 %s894_s9, 2  ;;  %s600_s9 = scalar_lea.sflag [#allocation4], %s1042_s26 }
  0x5b   : > { %461 = vrot.lane.b32.xlu0 %v301_v27, %s925_s24  ;;  %s709_s24 = sshll.u32 %s1042_s26, 2 }
  0x61   : > { %477 = vrot.lane.b32.xlu1 %v351_v47, %s927_s27 }
  0x62   : > { %481 = vrot.lane.b32.xlu2 %v337_v52, %s929_s30  ;;  %s612_s30 = scalar_lea.hbm %s1204_s1, %s711_s25 }
  0x63   : > { %473 = vrot.lane.b32.xlu0 %v333_v22, %s928_s29 }
  0x69   : > { %489 = vrot.lane.b32.xlu1 %v345_v2, %s930_s16  ;;  %s180_s16 = scalar_lea.vmem [#allocation5], %s709_s24 }
  0x6a   : > { %493 = vrot.lane.b32.xlu2 %v355_v4, %s932_s22  ;;  %s616_s22 = sshll.u32 %s612_s30, 4  ;;  %s617_s22 = int_to_ptr.hbm [resolvable:$true] %s616_s22 }
  0x6b   : > { %485 = vrot.lane.b32.xlu0 %v353_v63, %s931_s18  ;;  %s614_s18 = sshll.u32 %s180_s16, 4  ;;  %s615_s18 = int_to_ptr.vmem [resolvable:$true] %s614_s18 }
  0x71   : > { %501 = vrot.lane.b32.xlu1 %v357_v7, %s933_s28  ;;  %s834_s28 = sshra.s32 %s617_s22, 4  ;;  %s835_s28 = int_to_ptr.hbm [resolvable:$true] %s834_s28 }
  0x72   : > { %505 = vrot.lane.b32.xlu2 %v387_v10, %s935_s3  ;;  %p841_p5 = scmp.lt.s32.totalorder %s835_s28, %s1204_s1 }
  0x73   : > { %497 = vrot.lane.b32.xlu0 %v349_v59, %s934_s2  ;;  %s836_s2 = scalar_lea.hbm %s835_s28, 4 }
  0x74   : > { %p837_p2 = scmp.ne.s32.totalorder %s835_s28, %s836_s2 }
  0x76   : > { %p838_p3 = pnand %p837_p2, %p1004_p9 }
  0x78   : > { %p839_p4 = pneg %p838_p3 }
  0x79   : > { %513 = vrot.lane.b32.xlu1 %v391_v40, %s936_s4 }
  0x7a   : > { %517 = vrot.lane.b32.xlu2 %v407_v9, %s938_s12 }
  0x7b   : > { %509 = vrot.lane.b32.xlu0 %v405_v12, %s937_s5  ;;  %s840_s5 = scalar_lea.hbm %s1204_s1, 8 }
  0x7c   : > { %p842_p6 = scmp.lt.s32.totalorder %s840_s5, %s836_s2 }
  0x7e   : > { %p843_p7 = por %p842_p6, %p841_p5 }
  0x80   : > { %p844_p8 = pnand %p843_p7, %p839_p4 }
  0x81   : > { %525 = vrot.lane.b32.xlu1 %v409_v56, %s939_s13 }
  0x82   : > { %529 = vrot.lane.b32.xlu2 %v403_v62, %s941_s17 }
  0x83   : > { %521 = vrot.lane.b32.xlu0 %v399_v51, %s940_s15 }
  0x8b   : > { %533 = vrot.lane.b32.xlu0 %v411_v5, %s942_s23 }
  0x94   : > { %v434_v17 = vpop.permute.xlu2 %433 }
  0x9c   : > { %v446_v14 = vpop.permute.xlu2 %445 }
  0xa4   : > { %v430_v19 = vpop.permute.xlu2 %429 }
  0xab   : > { %v442_v13 = vpop.permute.xlu1 %441 }
  0xac   : > { %v458_v26 = vpop.permute.xlu2 %457 }
  0xad   : > { %v418_v15 = vpop.permute.xlu0 %417 }
  0xb3   : > { %v426_v16 = vpop.permute.xlu1 %425 }
  0xb4   : > { %v470_v32 = vpop.permute.xlu2 %469 }
  0xb5   : > { %v414_v18 = vpop.permute.xlu0 %413 }
  0xb6   : > { %v537_v20 = vsel %vm536_vm1, %v1083_v35, %v414_v18  ;;  %vm568_vm1 = vcmask 556032  }
  0xb7   : > { %v539_v22 = vsel %vm538_vm2, %v537_v20, %v418_v15  ;;  %vm570_vm2 = vcmask 588800  }
  0xbb   : > { %v422_v21 = vpop.permute.xlu1 %421 }
  0xbc   : > { %v541_v23 = vsel %vm540_vm3, %v539_v22, %v422_v21  ;;  %v482_v40 = vpop.permute.xlu2 %481  ;;  %vm572_vm3 = vcmask 621568  }
  0xbd   : > { %v543_v24 = vsel %vm542_vm4, %v541_v23, %v426_v16  ;;  %v438_v25 = vpop.permute.xlu0 %437  ;;  %vm574_vm4 = vcmask 654336  }
  0xbe   : > { %v545_v27 = vsel %vm544_vm5, %v543_v24, %v430_v19  ;;  %vm576_vm5 = vcmask 687104  }
  0xbf   : > { %v547_v29 = vsel %vm546_vm6, %v545_v27, %v434_v17  ;;  %vm578_vm6 = vcmask 719872  }
  0xc0   : > { %v549_v31 = vsel %vm548_vm7, %v547_v29, %v438_v25  ;;  %vm580_vm7 = vcmask 752640  }
  0xc1   : > { %v551_v35 = vsel %vm550_vm8, %v549_v31, %v442_v13  ;;  %vm582_vm8 = vcmask 785408  }
  0xc2   : > { %v553_v34 = vsel %vm552_vm9, %v551_v35, %v446_v14  ;;  %vm584_vm9 = vcmask 818176  }
  0xc3   : > { %v454_v28 = vpop.permute.xlu1 %453 }
  0xc4   : > { %v494_v48 = vpop.permute.xlu2 %493 }
  0xc5   : > { %v450_v30 = vpop.permute.xlu0 %449 }
  0xc6   : > { %v555_v36 = vsel %vm554_vm10, %v553_v34, %v450_v30  ;;  %vm586_vm10 = vcmask 850944  }
  0xc7   : > { %v557_v38 = vsel %vm556_vm11, %v555_v36, %v454_v28  ;;  %vm588_vm11 = vcmask 883712  }
  0xc8   : > { %v559_v41 = vsel %vm558_vm12, %v557_v38, %v458_v26  ;;  %vm590_vm12 = vcmask 916480  }
  0xcb   : > { %v466_v33 = vpop.permute.xlu1 %465 }
  0xcc   : > { %v506_v2 = vpop.permute.xlu2 %505 }
  0xcd   : > { %v462_v37 = vpop.permute.xlu0 %461 }
  0xce   : > { %v561_v42 = vsel %vm560_vm13, %v559_v41, %v462_v37  ;;  %vm592_vm13 = vcmask 949248  }
  0xcf   : > { %v563_v44 = vsel %vm562_vm14, %v561_v42, %v466_v33  ;;  %vm594_vm14 = vcmask 982016  }
  0xd0   : > { %v565_v45 = vsel %vm564_vm15, %v563_v44, %v470_v32  ;;  %vm596_vm15 = vcmask 1014784  }
  0xd3   : > { %v478_v39 = vpop.permute.xlu1 %477 }
  0xd4   : > { %v518_v63 = vpop.permute.xlu2 %517 }
  0xd5   : > { %v474_v43 = vpop.permute.xlu0 %473 }
  0xd6   : > { %v567_v47 = vsel %vm566_vm0, %v565_v45, %v474_v43 }
  0xd7   : > { %v569_v50 = vsel %vm568_vm1, %v567_v47, %v478_v39 }
  0xd8   : > { %v571_v51 = vsel %vm570_vm2, %v569_v50, %v482_v40 }
  0xdb   : > { %v490_v46 = vpop.permute.xlu1 %489 }
  0xdc   : > { %v530_v7 = vpop.permute.xlu2 %529 }
  0xdd   : > { %v486_v49 = vpop.permute.xlu0 %485 }
  0xde   : > { %v573_v52 = vsel %vm572_vm3, %v571_v51, %v486_v49 }
  0xdf   : > { %v575_v54 = vsel %vm574_vm4, %v573_v52, %v490_v46 }
  0xe0   : > { %v577_v56 = vsel %vm576_vm5, %v575_v54, %v494_v48 }
  0xe3   : > { %v502_v53 = vpop.permute.xlu1 %501 }
  0xe5   : > { %v498_v55 = vpop.permute.xlu0 %497 }
  0xe6   : > { %v579_v57 = vsel %vm578_vm6, %v577_v56, %v498_v55 }
  0xe7   : > { %v581_v58 = vsel %vm580_vm7, %v579_v57, %v502_v53 }
  0xe8   : > { %v583_v61 = vsel %vm582_vm8, %v581_v58, %v506_v2 }
  0xeb   : > { %v514_v60 = vpop.permute.xlu1 %513 }
  0xed   : > { %v510_v59 = vpop.permute.xlu0 %509 }
  0xee   : > { %v585_v62 = vsel %vm584_vm9, %v583_v61, %v510_v59 }
  0xef   : > { %v587_v0 = vsel %vm586_vm10, %v585_v62, %v514_v60 }
  0xf0   : > { %v589_v3 = vsel %vm588_vm11, %v587_v0, %v518_v63 }
  0xf3   : > { %v526_v5 = vpop.permute.xlu1 %525 }
  0xf5   : > { %v522_v1 = vpop.permute.xlu0 %521 }
  0xf6   : > { %v591_v4 = vsel %vm590_vm12, %v589_v3, %v522_v1 }
  0xf7   : > { %v593_v6 = vsel %vm592_vm13, %v591_v4, %v526_v5 }
  0xf8   : > { %v595_v8 = vsel %vm594_vm14, %v593_v6, %v530_v7 }
  0xfd   : > { %v534_v9 = vpop.permute.xlu0 %533 }
  0xfe   : > { %v597_v10 = vsel %vm596_vm15, %v595_v8, %v534_v9 }
  0xff   : > { %598 = vst [vmem:[%s180_s16] sm:$0x7] %v597_v10 }
 0x100   : > { %847 = shalt.err (!%p844_p8)
}
 0x101   : > { %726 = dma.vmem_to_hbm [thread:$0]  (%p1004_p9), %s615_s18, 64, %s617_s22, %s600_s9  }
 0x102 PF: > { %s628_s26 = sand.u32 1, %s882_s6   ;;  %p729_p10 = pnand %p703_p12, %p1011_p11 }
 0x103   : > { %s629_s15 = scalar_lea.sflag [#allocation4], %s628_s26 }
 0x104   : > { %p730_p13 = pneg %p729_p10 }
 0x106   : > { %877 = dma.done.wait (%p730_p13), %s629_s15, 64  }
 0x107   : > { %879 = vsyncadd (%p730_p13), %s629_s15, 4294967232  ;;  %s17_s11 = sadd.s32 1, %s902_s11   ;;  %s1209_s6 = smov %s886_s7 }
 0x108   : > { %p14_p0 = scmp.ge.s32.totalorder %s17_s11, 4   ;;  %s1210_s7 = smov %s890_s8 }
 0x109   : > { %s1211_s8 = smov %s1009_s20  ;;  %s1212_s9 = smov %s898_s10 }
 0x10a   : > { %s1213_s10 = smov %s1215_s14  ;;  %16 = sbr.rel (!%p14_p0) target bundleno = 6 (0x6), region = 74 }
 0x10f   :  { %635 = vsyncpa [#allocation3], 1 }
 0x110   :  { %637 = vsyncpa [#allocation3 + $0x1], 1 }
 0x111   :  { %638 = vsyncpa [#allocation4], 1 }
 0x112   :  { %640 = vsyncpa [#allocation4 + $0x1], 1 }

</bundles_post_ra>
